<compile_context>
chip_gen: v7x
topology: tpu7x:2x2x1
jax: 0.10.0
libtpu: 0.0.40
codegen_flags: <defaults>
</compile_context>

<pallas_src>
import jax
import jax.numpy as jnp
from jax.experimental import pallas as pl
from jax.experimental.pallas import tpu as pltpu

# ----------------------------- problem sizes -----------------------------
B, CIN, H, W = 2, 4, 16, 16
K, PAD = 3, 1
COUT = 8
NUM_CLASSES = 10
HW = H * W
CKK = CIN * K * K


# ----------------------------- Pallas kernel -----------------------------
def chain_kernel(x_ref, w1_ref, b1_ref, w2_ref, b2_ref, o_ref):
    # x_ref : [1, CKK, HW]   bf16 im2col patches for one batch sample (lane-dense)
    # w1_ref: [COUT, CKK]    bf16 conv weight (OIHW flattened over (Cin,kh,kw))
    # b1_ref: [COUT, 1]      f32  conv bias
    # w2_ref: [COUT, NUM_CLASSES] f32 linear weight (transposed)
    # b2_ref: [1, NUM_CLASSES]    f32 linear bias
    # o_ref : [1, 1, NUM_CLASSES] f32 logits for this batch sample
    x = x_ref[0]                                                 # [CKK, HW]

    # Conv as a single lane-dense matmul on the MXU (bf16 in, f32 accumulate).
    feat = jnp.dot(w1_ref[...], x,
                   preferred_element_type=jnp.float32)           # [COUT, HW]
    feat = jnp.maximum(feat + b1_ref[...], 0.0)                  # bias + ReLU (VPU)

    # Global average pool = lane reduction over the dense HW axis (XLU).
    pooled = jnp.sum(feat, axis=-1, keepdims=True) * (1.0 / HW)  # [COUT, 1]

    # Classifier head on the VPU: broadcast-multiply + sublane reduction.
    logits = jnp.sum(pooled * w2_ref[...], axis=0, keepdims=True) + b2_ref[...]
    o_ref[0] = logits.astype(o_ref.dtype)                        # [1, NUM_CLASSES]


def chain_models_pallas(x_nchw, conv_w, conv_b, fc_w, fc_b):
    """x_nchw: [B, CIN, H, W] float32. Returns [B, NUM_CLASSES] float32."""
    # --- glue: im2col (padding=1, stride=1) in PyTorch (c, kh, kw) flatten order,
    #     produced directly in lane-dense [B, CKK, HW] orientation (no transpose).
    # TODO(synk): fold the im2col into the kernel (9 shifted matmuls from a padded
    #             [CIN, H+2, W+2] VMEM tile) to remove the ~9x input inflation.
    xp = jnp.pad(x_nchw, ((0, 0), (0, 0), (PAD, PAD), (PAD, PAD)))
    patches = [xp[:, :, di:di + H, dj:dj + W]                    # each [B, CIN, H, W]
               for di in range(K) for dj in range(K)]
    cols = jnp.stack(patches, axis=2).reshape(B, CKK, HW)        # [B, CKK, HW]
    cols = cols.astype(jnp.bfloat16)                             # bf16 MXU operand

    # conv weight [COUT, CIN, K, K] -> [COUT, CKK] (matches (c, kh, kw) order above)
    w1 = conv_w.reshape(COUT, CKK).astype(jnp.bfloat16)
    b1 = conv_b.reshape(COUT, 1).astype(jnp.float32)
    w2 = fc_w.T.astype(jnp.float32)                              # [COUT, NUM_CLASSES]
    b2 = fc_b.reshape(1, NUM_CLASSES).astype(jnp.float32)

    vmem = pltpu.MemorySpace.VMEM
    out = pl.pallas_call(
        chain_kernel,
        out_shape=jax.ShapeDtypeStruct((B, 1, NUM_CLASSES), jnp.float32),
        grid=(B,),
        in_specs=[
            pl.BlockSpec((1, CKK, HW), lambda b: (b, 0, 0), memory_space=vmem),
            pl.BlockSpec((COUT, CKK), lambda b: (0, 0), memory_space=vmem),
            pl.BlockSpec((COUT, 1), lambda b: (0, 0), memory_space=vmem),
            pl.BlockSpec((COUT, NUM_CLASSES), lambda b: (0, 0), memory_space=vmem),
            pl.BlockSpec((1, NUM_CLASSES), lambda b: (0, 0), memory_space=vmem),
        ],
        out_specs=pl.BlockSpec((1, 1, NUM_CLASSES), lambda b: (b, 0, 0),
                               memory_space=vmem),
        compiler_params=pltpu.CompilerParams(
            dimension_semantics=("parallel",)),
    )(cols, w1, b1, w2, b2)
    return out.reshape(B, NUM_CLASSES)


# ----------------------------- pure-JAX reference -----------------------------
def chain_models_ref(x_nchw, conv_w, conv_b, fc_w, fc_b):
    y = jax.lax.conv_general_dilated(
        x_nchw.astype(jnp.float32), conv_w.astype(jnp.float32),
        window_strides=(1, 1), padding=((PAD, PAD), (PAD, PAD)),
        dimension_numbers=("NCHW", "OIHW", "NCHW"))
    y = y + conv_b.reshape(1, COUT, 1, 1)
    y = jnp.maximum(y, 0.0)
    y = jnp.mean(y, axis=(2, 3))                                 # [B, COUT]
    return y @ fc_w.T + fc_b


if __name__ == "__main__":
    key = jax.random.PRNGKey(0)
    k_x, k_cw, k_cb, k_fw, k_fb = jax.random.split(key, 5)

    x = jax.random.normal(k_x, (B, CIN, H, W), dtype=jnp.float32)
    conv_w = 0.1 * jax.random.normal(k_cw, (COUT, CIN, K, K), dtype=jnp.float32)
    conv_b = 0.1 * jax.random.normal(k_cb, (COUT,), dtype=jnp.float32)
    fc_w = 0.1 * jax.random.normal(k_fw, (NUM_CLASSES, COUT), dtype=jnp.float32)
    fc_b = 0.1 * jax.random.normal(k_fb, (NUM_CLASSES,), dtype=jnp.float32)

    out = chain_models_pallas(x, conv_w, conv_b, fc_w, fc_b)
    out = jax.block_until_ready(out)

    ref = jax.block_until_ready(chain_models_ref(x, conv_w, conv_b, fc_w, fc_b))
    assert out.shape == (B, NUM_CLASSES)
    # bf16 MXU operands with f32 accumulation -> loosen tolerance slightly.
    assert jnp.allclose(out, ref, atol=2e-2, rtol=2e-2), (out, ref)

    print("KERNEL_OK")
</pallas_src>

<mosaic_0001>
module attributes {stable_mosaic.version = 11 : i64} {
  func.func @chain_kernel(%arg0: i32, %arg1: memref<1x36x256xbf16, #tpu.memory_space<vmem>>, %arg2: memref<8x36xbf16, #tpu.memory_space<vmem>>, %arg3: memref<8x1xf32, #tpu.memory_space<vmem>>, %arg4: memref<8x10xf32, #tpu.memory_space<vmem>>, %arg5: memref<1x10xf32, #tpu.memory_space<vmem>>, %arg6: memref<1x1x10xf32, #tpu.memory_space<vmem>>) attributes {dimension_semantics = [#tpu.dimension_semantics<parallel>], iteration_bounds = array<i64: 2>, scalar_prefetch = 0 : i64, scratch_operands = 0 : i64, tpu.core_type = #tpu.core_type<tc>, window_params = [{transform_indices = @transform_0, window_bounds = array<i64: 1, 36, 256>}, {pipeline_mode = #tpu.pipeline_mode<synchronous>, transform_indices = @transform_1, window_bounds = array<i64: 8, 36>}, {pipeline_mode = #tpu.pipeline_mode<synchronous>, transform_indices = @transform_2, window_bounds = array<i64: 8, 1>}, {pipeline_mode = #tpu.pipeline_mode<synchronous>, transform_indices = @transform_3, window_bounds = array<i64: 8, 10>}, {pipeline_mode = #tpu.pipeline_mode<synchronous>, transform_indices = @transform_4, window_bounds = array<i64: 1, 10>}, {transform_indices = @transform_5, window_bounds = array<i64: 1, 1, 10>}]} {
    %c0 = arith.constant 0 : index
    %c0_0 = arith.constant 0 : index
    %c0_1 = arith.constant 0 : index
    %0 = vector.load %arg1[%c0, %c0_0, %c0_1] : memref<1x36x256xbf16, #tpu.memory_space<vmem>>, vector<1x36x256xbf16>
    %1 = vector.shape_cast %0 : vector<1x36x256xbf16> to vector<36x256xbf16>
    %c0_2 = arith.constant 0 : index
    %c0_3 = arith.constant 0 : index
    %2 = vector.load %arg2[%c0_2, %c0_3] : memref<8x36xbf16, #tpu.memory_space<vmem>>, vector<8x36xbf16>
    %cst = arith.constant dense<0.000000e+00> : vector<8x256xf32>
    %3 = tpu.matmul %2, %1, %cst {dimension_numbers = #tpu.dot_dimension_numbers<[1], [0], [0], [1], [0, 0, 1, 1], [], []>} : vector<8x36xbf16>, vector<36x256xbf16>, vector<8x256xf32> -> vector<8x256xf32>
    %c0_4 = arith.constant 0 : index
    %c0_5 = arith.constant 0 : index
    %4 = vector.load %arg3[%c0_4, %c0_5] : memref<8x1xf32, #tpu.memory_space<vmem>>, vector<8x1xf32>
    %5 = vector.broadcast %4 : vector<8x1xf32> to vector<8x256xf32>
    %6 = arith.addf %3, %5 : vector<8x256xf32>
    %cst_6 = arith.constant 0.000000e+00 : f32
    %7 = vector.broadcast %cst_6 : f32 to vector<8x256xf32>
    %8 = arith.maximumf %6, %7 : vector<8x256xf32>
    %cst_7 = arith.constant dense<0.000000e+00> : vector<8xf32>
    %9 = vector.multi_reduction <add>, %8, %cst_7 [1] : vector<8x256xf32> to vector<8xf32>
    %10 = vector.shape_cast %9 : vector<8xf32> to vector<8x1xf32>
    %cst_8 = arith.constant 3.906250e-03 : f32
    %11 = vector.broadcast %cst_8 : f32 to vector<8x1xf32>
    %12 = arith.mulf %10, %11 : vector<8x1xf32>
    %c0_9 = arith.constant 0 : index
    %c0_10 = arith.constant 0 : index
    %13 = vector.load %arg4[%c0_9, %c0_10] : memref<8x10xf32, #tpu.memory_space<vmem>>, vector<8x10xf32>
    %14 = vector.broadcast %12 : vector<8x1xf32> to vector<8x10xf32>
    %15 = arith.mulf %14, %13 : vector<8x10xf32>
    %cst_11 = arith.constant dense<0.000000e+00> : vector<10xf32>
    %16 = vector.multi_reduction <add>, %15, %cst_11 [0] : vector<8x10xf32> to vector<10xf32>
    %17 = vector.shape_cast %16 : vector<10xf32> to vector<1x10xf32>
    %c0_12 = arith.constant 0 : index
    %c0_13 = arith.constant 0 : index
    %18 = vector.load %arg5[%c0_12, %c0_13] : memref<1x10xf32, #tpu.memory_space<vmem>>, vector<1x10xf32>
    %19 = arith.addf %17, %18 : vector<1x10xf32>
    %c0_14 = arith.constant 0 : index
    %c0_15 = arith.constant 0 : index
    %c0_16 = arith.constant 0 : index
    %20 = vector.load %arg6[%c0_14, %c0_15, %c0_16] : memref<1x1x10xf32, #tpu.memory_space<vmem>>, vector<1x1x10xf32>
    %21 = vector.shape_cast %20 : vector<1x1x10xf32> to vector<1x10xf32>
    %22 = vector.shape_cast %19 : vector<1x10xf32> to vector<1x1x10xf32>
    tpu.vector_store %arg6[%c0_14, %c0_15, %c0_16], %22 {strides = array<i32>} : memref<1x1x10xf32, #tpu.memory_space<vmem>>, vector<1x1x10xf32>,
    return
  }
  func.func @transform_0(%arg0: i32) -> (i32, i32, i32) {
    %c0_i32 = arith.constant 0 : i32
    %c0_i32_0 = arith.constant 0 : i32
    %c0_i32_1 = arith.constant 0 : i32
    return %arg0, %c0_i32, %c0_i32_0 : i32, i32, i32
  }
  func.func @transform_1(%arg0: i32) -> (i32, i32) {
    %c0_i32 = arith.constant 0 : i32
    %c0_i32_0 = arith.constant 0 : i32
    %c0_i32_1 = arith.constant 0 : i32
    return %c0_i32, %c0_i32_0 : i32, i32
  }
  func.func @transform_2(%arg0: i32) -> (i32, i32) {
    %c0_i32 = arith.constant 0 : i32
    %c0_i32_0 = arith.constant 0 : i32
    %c0_i32_1 = arith.constant 0 : i32
    return %c0_i32, %c0_i32_0 : i32, i32
  }
  func.func @transform_3(%arg0: i32) -> (i32, i32) {
    %c0_i32 = arith.constant 0 : i32
    %c0_i32_0 = arith.constant 0 : i32
    %c0_i32_1 = arith.constant 0 : i32
    return %c0_i32, %c0_i32_0 : i32, i32
  }
  func.func @transform_4(%arg0: i32) -> (i32, i32) {
    %c0_i32 = arith.constant 0 : i32
    %c0_i32_0 = arith.constant 0 : i32
    %c0_i32_1 = arith.constant 0 : i32
    return %c0_i32, %c0_i32_0 : i32, i32
  }
  func.func @transform_5(%arg0: i32) -> (i32, i32, i32) {
    %c0_i32 = arith.constant 0 : i32
    %c0_i32_0 = arith.constant 0 : i32
    %c0_i32_1 = arith.constant 0 : i32
    return %arg0, %c0_i32, %c0_i32_0 : i32, i32, i32
  }
}

</mosaic_0001>

<bundles_post_ra>
// kernel: tpu_custom_call.1
= control target key start
LH: loop header
LB: loop body
LE: loop exit
PB: predicated region body
PF: predicated region fallthrough
CT: control target
= control target key end

     0   :  { %10 = vsyncpa [#allocation3], 0  ;;  %s674_s0 = inlined_call_operand.vmem [shape: bf16[2,36,256], index: 0, kind: input, shape index: {}]   ;;  %s675_s1 = inlined_call_operand.vmem [shape: bf16[8,36], index: 1, kind: input, shape index: {}]   ;;  %s676_s2 = inlined_call_operand.vmem [shape: f32[8,1], index: 2, kind: input, shape index: {}]   ;;  %s677_s3 = inlined_call_operand.vmem [shape: f32[8,10], index: 3, kind: input, shape index: {}]   ;;  %s678_s4 = inlined_call_operand.vmem [shape: f32[1,10], index: 4, kind: input, shape index: {}]   ;;  %s679_s5 = inlined_call_operand.hbm [shape: f32[2,1,10], index: 5, kind: output, shape index: {}]  }
   0x1   :  { %12 = vsyncpa [#allocation3 + $0x1], 0  ;;  %s562_s18 = smov 0   ;;  %s564_s19 = smov 0  }
   0x2   :  { %s566_s20 = smov 0   ;;  %s568_s21 = smov 0  }
   0x3 LB: > { %s583_s22 = sadd.s32 4294967295, %s528_s21   ;;  %s400_s23 = sadd.s32 4294967294, %s528_s21   ;;  %s528_s21 = sphi %s568_s21, %s685_s21   ;;  %s524_s20 = sphi %s566_s20, %s684_s20   ;;  %s520_s19 = sphi %s564_s19, %s683_s19   ;;  %s516_s18 = sphi %s562_s18, %s682_s18  }
   0x4   : > { %s587_s24 = sadd.s32 1, %s528_s21   ;;  %s135_s25 = sadd.s32 1, %s524_s20 }
   0x5   : > { %s132_s26 = ssub.s32 %s528_s21, %s587_s24  ;;  %p145_p0 = scmp.ne.s32.totalorder %s524_s20, %s520_s19 }
   0x6   : > { %p133_p1 = scmp.eq.s32.totalorder %s132_s26, 0  ;;  %p146_p2 = scmp.eq.s32.totalorder %s583_s22, 1 }
   0x7   : > { %p151_p3 = scmp.ne.s32.totalorder %s520_s19, %s516_s18  ;;  %p152_p4 = scmp.eq.s32.totalorder %s400_s23, 1 }
   0x8   : > { %s598_s27 = scalar_select %p133_p1, %s524_s20, %s135_s25  }
   0x9   : > { %p600_p5 = por %p146_p2, %p145_p0  ;;  %p604_p6 = por %p152_p4, %p151_p3 }
   0xa   : > { %p403_p7 = scmp.ge.s32.totalorder %s528_s21, 1  ;;  %p190_p8 = scmp.lt.s32.totalorder %s528_s21, 3 }
   0xc   : > { %p191_p9 = pnand %p403_p7, %p190_p8 }
   0xd   : > { %p217_p10 = scmp.lt.s32.totalorder (!%p191_p9), %s583_s22, 1  ;;  %v530_v0 = vmov (!%p191_p9), 0   ;;  %v229_v1 = vld [vmem:[%s676_s2] sm:$0xff] (!%p191_p9)  ;;  %vm264_vm0 = vcmask (!%p191_p9), 1041408   ;;  %vm260_vm1 = vcmask (!%p191_p9), 293888   ;;  %vm320_vm2 = vcmask (!%p191_p9), 80896  }
   0xe   : > { %194 = sbr.rel (%p191_p9) target bundleno = 433 (0x1b1), region = 40  ;;  %303 = vmatprep.mubr.bf16.mxu0 (!%p191_p9), %v530_v0  ;;  %457 = vset.pattern.permute.xlu0 (!%p191_p9), %v530_v0  ;;  %v228_v10 = vld [vmem:[%s675_s1] sm:$0xf] (!%p191_p9)  ;;  %s215_s16 = sand.u32 (!%p191_p9), 1, %s520_s19   ;;  %vm330_vm3 = vcmask (!%p191_p9), 73728  }
   0xf   : > { %232 = vperm.xlu0 (!%p191_p9), %457, %v229_v1   ;;  %v318_v21 = vld [vmem:[%s677_s3] sm:$0xff] (!%p191_p9)  ;;  %s413_s25 = sshll.u32 (!%p191_p9), %s583_s22, 4  ;;  %s216_s26 = scalar_lea.vmem (!%p191_p9), [#allocation2], %s215_s16 }
  0x10   : > { %v328_v31 = vld [vmem:[%s678_s4] sm:$0x1] (!%p191_p9)  ;;  %s345_s30 = sshll.u32 (!%p191_p9), %s216_s26, 4  ;;  %s333_s9 = scalar_lea.sflag (!%p191_p9), [#allocation3], %s215_s16  ;;  %s634_s30 = int_to_ptr.vmem [resolvable:$true] %s345_s30 }
  0x11   : > { %s466_s10 = scalar_lea.vmem (!%p191_p9), %s634_s30, 16 }
  0x12   : > { %p467_p11 = scmp.ne.s32.totalorder (!%p191_p9), %s634_s30, %s466_s10 }
  0x14   : > { %p468_p12 = pnand (!%p191_p9), %p467_p11, %p600_p5 }
  0x15   : > { %s218_s7 = scalar_select %p217_p10, %s583_s22, 1 }
  0x16   : > { %p469_p13 = pneg %p468_p12  ;;  %s531_s22 = smov [#allocation2]  }
  0x17   : > { %s416_s8 = smul.u32 40, %s218_s7 }
  0x19   : > { %s221_s11 = scalar_lea.vmem %s674_s0, %s416_s8  ;;  %s632_s8 = scalar_lea.hbm %s679_s5, %s413_s25 }
  0x1a   : > { %v458_v2 = vld [vmem:[%s221_s11 + $0x4] ss:$8 sps:$4 sm:$0xff]   ;;  %v460_v3 = vld [vmem:[%s221_s11] ss:$8 sps:$4 sm:$0xff]   ;;  %v461_v4 = vld [vmem:[%s221_s11 + $0x14] ss:$8 sps:$4 sm:$0xff]  }
  0x1b   : > { %271 = vmatprep.subr.bf16.mxu0 %v458_v2  ;;  %v227_v5 = vld [vmem:[%s221_s11 + $0x20] sm:$0x33]  ;;  %v463_v6 = vld [vmem:[%s221_s11 + $0x10] ss:$8 sps:$4 sm:$0xff]   ;;  %s470_s11 = sshll.u32 %s531_s22, 4  ;;  %s471_s11 = int_to_ptr.vmem [resolvable:$false] %s470_s11 }
  0x1c   : > { %272 = vmatpush1.bf16.msra.mxu0 %v460_v3  ;;  %v410_v7 = vcombine.high %v227_v5, %v227_v5  ;;  %v409_v8 = vcombine.low %v227_v5, %v227_v5  ;;  %s472_s12 = scalar_lea.vmem %s471_s11, 32  ;;  %p473_p0 = scmp.lt.s32.totalorder %s634_s30, %s471_s11 }
  0x1d   : > { %273 = vmatprep.subr.bf16.mxu0 %v461_v4  ;;  %p474_p1 = scmp.lt.s32.totalorder %s472_s12, %s466_s10 }
  0x1e   : > { %v266_v9 = vsel %vm264_vm0, %v409_v8, 0 }
  0x1f   : > { %p475_p2 = por %p474_p1, %p473_p0 }
  0x20   : > { %274 = vmatpush1.bf16.msra.mxu0 %v463_v6 }
  0x21   : > { %411 = vmatprep.subr.msk.bf16.mxu0 %vm264_vm0, %v410_v7  ;;  %p476_p3 = pnand %p475_p2, %p469_p13 }
  0x24   : > { %276 = vmatpush1.bf16.msra.mxu0 %v266_v9 }
  0x27   : > { %412 = vmatmul.mubr.msk.bf16.vlgmr.msra.gmra.mrb[0].mxu0 %vm260_vm1, %v228_v10 }
  0x8e   : > { %v233_v11 = vpop.permute.xlu0 %232 }
  0xfa   : > { %v305_v12 = vpop.f32.mrb[0].mxu0 }
  0xfb   : > { %v306_v13 = vadd.f32 %v305_v12, %v233_v11  ;;  %v307_v14 = vpop.f32.mrb[1].mxu0 }
  0xfc   : > { %v308_v15 = vadd.f32 %v307_v14, %v233_v11  ;;  %v309_v16 = vpop.f32.mrb[2].mxu0 }
  0xfd   : > { %v312_v17 = vmax.f32 %v306_v13, 0.0  ;;  %v310_v18 = vpop.f32.mrb[3].mxu0 }
  0xfe   : > { %v313_v19 = vmax.f32 %v308_v15, 0.0 }
 0x100   : > { %v314_v20 = vadd.f32 %v313_v19, %v312_v17 }
 0x102   : > { %315 = vadd.xlane.f32.xlu0 %v314_v20 }
 0x18f   : > { %v316_v22 = vpop.xlane.xlu0 %315 }
 0x190   : > { %v317_v23 = vmul.f32 0.00390625, %v316_v22 }
 0x192   : > { %v319_v24 = vmul.f32 %v318_v21, %v317_v23 }
 0x194   : > { %v321_v25 = vsel %vm320_vm2, %v319_v24, 0.0 }
 0x195   : > { %v322_v26 = vrot.slane %v321_v25, 4 }
 0x197   : > { %v323_v27 = vadd.f32 %v322_v26, %v321_v25 }
 0x199   : > { %v324_v28 = vrot.slane %v323_v27, 2 }
 0x19b   : > { %v325_v29 = vadd.f32 %v324_v28, %v323_v27 }
 0x19d   : > { %v326_v30 = vrot.slane %v325_v29, 1 }
 0x19f   : > { %v327_v32 = vadd.f32 %v326_v30, %v325_v29 }
 0x1a1   : > { %v329_v33 = vadd.f32 %v328_v31, %v327_v32 }
 0x1a3   : > { %331 = vst.msk [vmem:[%s216_s26] sm:$0x1] %vm330_vm3, %v329_v33 }
 0x1a4   : > { %479 = shalt.err (!%p476_p3)
}
 0x1a5   : > { %s480_s13 = scalar_lea.hbm %s632_s8, 16  ;;  %s484_s16 = scalar_lea.hbm %s679_s5, 32 }
 0x1a6   : > { %p481_p4 = scmp.ne.s32.totalorder %s632_s8, %s480_s13  ;;  %p485_p9 = scmp.lt.u32.totalorder %s632_s8, %s679_s5 }
 0x1a7   : > { %p486_p10 = scmp.lt.u32.totalorder %s484_s16, %s480_s13  ;;  %p488_p12 = scmp.lt.u32.totalorder %s480_s13, %s632_s8 }
 0x1a8   : > { %p482_p7 = pnand %p481_p4, %p600_p5 }
 0x1a9   : > { %p487_p11 = por %p486_p10, %p485_p9 }
 0x1aa   : > { %p483_p8 = pneg %p482_p7 }
 0x1ab   : > { %p489_p13 = por %p488_p12, %p487_p11 }
 0x1ad   : > { %p490_p0 = pnand %p489_p13, %p483_p8 }
 0x1af   : > { %493 = shalt.err (!%p490_p0)
}
 0x1b0   : > { %417 = dma.vmem_to_hbm [thread:$0]  (%p600_p5), %s634_s30, 16, %s632_s8, %s333_s9  }
 0x1b1 PF: > { %p423_p1 = scmp.ge.s32.totalorder %s528_s21, 2  ;;  %s357_s25 = sand.u32 1, %s516_s18  }
 0x1b2   : > { %s358_s26 = scalar_lea.sflag [#allocation3], %s357_s25 }
 0x1b3   : > { %p420_p2 = pnand %p423_p1, %p604_p6 }
 0x1b5   : > { %511 = dma.done.wait (!%p420_p2), %s358_s26, 16  }
 0x1b6   : > { %513 = vsyncadd (!%p420_p2), %s358_s26, 4294967280  ;;  %p15_p3 = scmp.ge.s32.totalorder %s587_s24, 4   ;;  %s682_s18 = smov %s520_s19 }
 0x1b7   : > { %s683_s19 = smov %s524_s20  ;;  %s684_s20 = smov %s598_s27 }
 0x1b8   : > { %s685_s21 = smov %s587_s24  ;;  %17 = sbr.rel (!%p15_p3) target bundleno = 3 (0x3), region = 75 }
 0x1bf   :  { %362 = vsyncpa [#allocation3], 1 }
 0x1c0   :  { %364 = vsyncpa [#allocation3 + $0x1], 1 }

</bundles_post_ra>
